<compile_context>
chip_gen: v6e
topology: v6e:2x2x1
jax: 0.10.0
libtpu: 0.0.40
codegen_flags: <defaults>
</compile_context>

<pallas_src>
import jax
import jax.numpy as jnp
from jax.experimental import pallas as pl
from jax.experimental.pallas import tpu as pltpu

LANE = 128      # node axis is kept lane-dense
SUBLANE = 8
MIB = 1024 * 1024


def _round_up(x, m):
    return (x + m - 1) // m * m


def _vmem_budget_bytes():
    """~70% of detected per-core VMEM; falls back to the v7x 64 MiB floor."""
    try:
        cap = int(pltpu.get_tpu_info().vmem_capacity_bytes)
    except Exception:
        cap = 0
    if cap <= 0:
        cap = 64 * MIB
    return int(cap * 0.7)


# ---------------------------------------------------------------------------
# Kernel 1 (small graphs): fully fused forward, A resident in VMEM.
# Transposed layout: features on sublanes, nodes on lanes.
#   H1^T = tanh(W1^T @ (X^T  @ A) + b1)
#   H2^T = tanh(W2^T @ (H1^T @ A) + b2)
#   out^T = Wl^T @ (H2^T @ P^T) + bl
# ---------------------------------------------------------------------------
def gcn_fused_kernel(x_ref, a_ref, w1_ref, b1_ref, w2_ref, b2_ref,
                     pt_ref, wl_ref, bl_ref, out_ref):
    s1 = jnp.dot(x_ref[...], a_ref[...], preferred_element_type=jnp.float32)
    h1 = jnp.tanh(jnp.dot(w1_ref[...], s1, preferred_element_type=jnp.float32)
                  + b1_ref[...]).astype(jnp.bfloat16)
    s2 = jnp.dot(h1, a_ref[...], preferred_element_type=jnp.float32)
    h2 = jnp.tanh(jnp.dot(w2_ref[...], s2, preferred_element_type=jnp.float32)
                  + b2_ref[...]).astype(jnp.bfloat16)
    pooled = jnp.dot(h2, pt_ref[...], preferred_element_type=jnp.float32)
    out_ref[...] = (jnp.dot(wl_ref[...], pooled,
                            preferred_element_type=jnp.float32) + bl_ref[...])


def gcn_fused(x_t, a_bf16, w1_t, b1_c, w2_t, b2_c, p_t, wl_t, bl_c, *, vmem_limit):
    g_pad = p_t.shape[1]
    vmem = pl.BlockSpec(memory_space=pltpu.MemorySpace.VMEM)
    return pl.pallas_call(
        gcn_fused_kernel,
        out_shape=jax.ShapeDtypeStruct((1, g_pad), jnp.float32),
        in_specs=[vmem] * 9,
        out_specs=vmem,
        compiler_params=pltpu.CompilerParams(vmem_limit_bytes=int(vmem_limit)),
    )(x_t, a_bf16, w1_t, b1_c, w2_t, b2_c, p_t, wl_t, bl_c)


# ---------------------------------------------------------------------------
# Kernel 2 (large graphs, layer 1): stream A column tiles, wide tiles.
#   H_out^T[:, j] = tanh(W^T @ (H_in^T @ A[:, j]) + b)
# ---------------------------------------------------------------------------
def gcn_layer_stream_kernel(hin_ref, a_ref, wt_ref, b_ref, hout_ref):
    s = jnp.dot(hin_ref[...], a_ref[...], preferred_element_type=jnp.float32)
    h = jnp.dot(wt_ref[...], s, preferred_element_type=jnp.float32) + b_ref[...]
    hout_ref[...] = jnp.tanh(h).astype(hout_ref.dtype)


def gcn_layer_stream(hin_t, a_bf16, w_t, b_col, *, tile_n, vmem_limit):
    cin, n_pad = hin_t.shape
    cout = w_t.shape[0]
    return pl.pallas_call(
        gcn_layer_stream_kernel,
        out_shape=jax.ShapeDtypeStruct((cout, n_pad), jnp.bfloat16),
        grid_spec=pltpu.PrefetchScalarGridSpec(
            num_scalar_prefetch=0,
            grid=(n_pad // tile_n,),
            in_specs=[
                pl.BlockSpec((cin, n_pad), lambda j: (0, 0)),     # H_in^T resident
                pl.BlockSpec((n_pad, tile_n), lambda j: (0, j)),  # A column tile
                pl.BlockSpec((cout, cin), lambda j: (0, 0)),      # W^T
                pl.BlockSpec((cout, 1), lambda j: (0, 0)),        # bias column
            ],
            out_specs=pl.BlockSpec((cout, tile_n), lambda j: (0, j)),
        ),
        compiler_params=pltpu.CompilerParams(
            # TODO(synk): on v7x use pltpu.CORE_PARALLEL here (plain "parallel"
            # does not shard tiles across the 2 TCs); kept portable for now.
            dimension_semantics=("parallel",),
            vmem_limit_bytes=int(vmem_limit),
        ),
    )(hin_t, a_bf16, w_t, b_col)


# ---------------------------------------------------------------------------
# Kernel 3 (large graphs, layer 2 + pool + linear): stream A and P^T tiles,
# accumulate pooled^T in VMEM scratch, finalize with the Linear on last tile.
# ---------------------------------------------------------------------------
def gcn_layer2_pool_kernel(hin_ref, a_ref, pt_ref, w2_ref, b2_ref,
                           wl_ref, bl_ref, out_ref, acc_ref):
    j = pl.program_id(0)

    @pl.when(j == 0)
    def _():
        acc_ref[...] = jnp.zeros_like(acc_ref)

    s = jnp.dot(hin_ref[...], a_ref[...], preferred_element_type=jnp.float32)
    h = jnp.tanh(jnp.dot(w2_ref[...], s, preferred_element_type=jnp.float32)
                 + b2_ref[...]).astype(jnp.bfloat16)
    acc_ref[...] += jnp.dot(h, pt_ref[...], preferred_element_type=jnp.float32)

    @pl.when(j == pl.num_programs(0) - 1)
    def _():
        out_ref[...] = (jnp.dot(wl_ref[...], acc_ref[...],
                                preferred_element_type=jnp.float32) + bl_ref[...])


def gcn_layer2_pool(h1_t, a_bf16, p_t, w2_t, b2_c, wl_t, bl_c, *, tile_n, vmem_limit):
    hidden, n_pad = h1_t.shape
    g_pad = p_t.shape[1]
    return pl.pallas_call(
        gcn_layer2_pool_kernel,
        out_shape=jax.ShapeDtypeStruct((1, g_pad), jnp.float32),
        grid_spec=pltpu.PrefetchScalarGridSpec(
            num_scalar_prefetch=0,
            grid=(n_pad // tile_n,),
            in_specs=[
                pl.BlockSpec((hidden, n_pad), lambda j: (0, 0)),   # H1^T resident
                pl.BlockSpec((n_pad, tile_n), lambda j: (0, j)),   # A column tile
                pl.BlockSpec((tile_n, g_pad), lambda j: (j, 0)),   # P^T row tile
                pl.BlockSpec((hidden, hidden), lambda j: (0, 0)),  # W2^T
                pl.BlockSpec((hidden, 1), lambda j: (0, 0)),       # b2
                pl.BlockSpec((1, hidden), lambda j: (0, 0)),       # Wl^T
                pl.BlockSpec((1, 1), lambda j: (0, 0)),            # bl
            ],
            out_specs=pl.BlockSpec((1, g_pad), lambda j: (0, 0)),
            scratch_shapes=[pltpu.VMEM((hidden, g_pad), jnp.float32)],
        ),
        compiler_params=pltpu.CompilerParams(
            dimension_semantics=("arbitrary",),  # column-tile axis is an accumulator
            vmem_limit_bytes=int(vmem_limit),
        ),
    )(h1_t, a_bf16, p_t, w2_t, b2_c, wl_t, bl_c)


# ---------------------------------------------------------------------------
# Plain-JAX graph preprocessing (glue outside the kernels)
# ---------------------------------------------------------------------------
def build_norm_adj(edge_index, num_nodes, n_pad, dtype):
    """Dense D^{-1/2}(A+I)D^{-1/2}, add_remaining_self_loops semantics, padded."""
    src, dst = edge_index[0], edge_index[1]
    a_hat = jnp.zeros((num_nodes, num_nodes), jnp.float32)
    a_hat = a_hat.at[dst, src].add(1.0)                  # message flows src -> dst
    idx = jnp.arange(num_nodes)
    a_hat = a_hat.at[idx, idx].set(jnp.maximum(a_hat[idx, idx], 1.0))
    deg = jnp.sum(a_hat, axis=1)
    d_inv_sqrt = jax.lax.rsqrt(deg)
    a_norm = (d_inv_sqrt[:, None] * a_hat * d_inv_sqrt[None, :]).astype(dtype)
    out = jnp.zeros((n_pad, n_pad), dtype)
    return out.at[:num_nodes, :num_nodes].set(a_norm)


def build_pool_t(batch, num_nodes, num_graphs, n_pad, g_pad, dtype):
    """P^T[n, g] = 1/count[g] if batch[n] == g else 0 (mean pool), padded."""
    onehot = (batch[:, None] == jnp.arange(num_graphs, dtype=batch.dtype)[None, :])
    onehot = onehot.astype(jnp.float32)                  # [N, G]
    counts = jnp.maximum(jnp.sum(onehot, axis=0, keepdims=True), 1.0)
    p_t = (onehot / counts).astype(dtype)
    out = jnp.zeros((n_pad, g_pad), dtype)
    return out.at[:num_nodes, :num_graphs].set(p_t)


# ---------------------------------------------------------------------------
# VMEM sizing helpers
# ---------------------------------------------------------------------------
def _fused_vmem_bytes(n_pad, fin_pad, hidden, g_pad):
    a = 2 * n_pad * n_pad                                # bf16 A, resident
    x = 2 * fin_pad * n_pad
    p = 2 * n_pad * g_pad
    inter = 4 * n_pad * (fin_pad + 3 * hidden)           # f32 intermediates
    return a + x + p + inter + (2 * MIB)


def _stream_vmem_bytes(n_pad, tile_n, fin_pad, hidden, g_pad):
    l1 = (2 * n_pad * tile_n * 2 + fin_pad * n_pad * 2
          + 2 * hidden * tile_n * 2 + 4 * tile_n * (fin_pad + hidden))
    l2 = (2 * n_pad * tile_n * 2 + hidden * n_pad * 2 + 2 * tile_n * g_pad * 2
          + hidden * g_pad * 4 + 4 * tile_n * 2 * hidden + g_pad * 4)
    return max(l1, l2) + (2 * MIB)


def _pick_tile_n(n_pad, budget, fin_pad, hidden, g_pad):
    for t in (1024, 512, 256, 128):
        if t <= n_pad and n_pad % t == 0:
            if _stream_vmem_bytes(n_pad, t, fin_pad, hidden, g_pad) <= budget:
                return t
    return 128


# ---------------------------------------------------------------------------
# Forward wrapper
# ---------------------------------------------------------------------------
def gcn_forward(x, edge_index, batch, params, *, num_graphs,
                force_streaming=False, tile_n=None):
    w1, b1, w2, b2, wl, bl = params       # torch-layout params (in, out) / (1, out)
    n, fin = x.shape
    hidden = w1.shape[1]

    n_pad = _round_up(max(n, LANE), LANE)       # decoupled from tile_n
    fin_pad = _round_up(fin, SUBLANE)
    g_pad = _round_up(max(num_graphs, LANE), LANE)

    budget = _vmem_budget_bytes()
    vmem_limit = max(budget, 32 * MIB)

    # TODO(synk): for static graphs hoist A / P construction out of the forward;
    # for large/sparse graphs replace dense A with a scalar-prefetch gather /
    # segment-sum kernel; on v5e/v6e stream A as int8 (fp8-e4m3 on v7x) to halve
    # HBM bytes (requires a quant-aware reference).
    a_bf16 = build_norm_adj(edge_index, n, n_pad, jnp.bfloat16)
    p_t = build_pool_t(batch, n, num_graphs, n_pad, g_pad, jnp.bfloat16)

    # Transposed, zero-padded operands (features on sublanes, nodes on lanes).
    x_t = jnp.zeros((fin_pad, n_pad), jnp.bfloat16).at[:fin, :n].set(
        x.T.astype(jnp.bfloat16))
    w1_t = jnp.zeros((hidden, fin_pad), jnp.float32).at[:, :fin].set(w1.T)
    w2_t = w2.T
    b1_c = b1.reshape(hidden, 1)
    b2_c = b2.reshape(hidden, 1)
    wl_t = wl.T.reshape(1, hidden)
    bl_c = bl.reshape(1, 1)

    fused_need = _fused_vmem_bytes(n_pad, fin_pad, hidden, g_pad)
    if (not force_streaming) and fused_need <= budget:
        out_t = gcn_fused(x_t, a_bf16, w1_t, b1_c, w2_t, b2_c, p_t, wl_t, bl_c,
                          vmem_limit=vmem_limit)
    else:
        t = tile_n if tile_n is not None else _pick_tile_n(
            n_pad, budget, fin_pad, hidden, g_pad)
        assert n_pad % t == 0, (n_pad, t)
        h1_t = gcn_layer_stream(x_t, a_bf16, w1_t, b1_c,
                                tile_n=t, vmem_limit=vmem_limit)
        out_t = gcn_layer2_pool(h1_t, a_bf16, p_t, w2_t, b2_c, wl_t, bl_c,
                                tile_n=t, vmem_limit=vmem_limit)
    return out_t[0, :num_graphs].reshape(num_graphs, 1)


def init_params(key, in_feats=2, hidden=16, out_feats=1):
    k1, k2, k3 = jax.random.split(key, 3)
    w1 = jax.random.normal(k1, (in_feats, hidden), jnp.float32) * 0.5
    b1 = jnp.zeros((1, hidden), jnp.float32)
    w2 = jax.random.normal(k2, (hidden, hidden), jnp.float32) * 0.25
    b2 = jnp.zeros((1, hidden), jnp.float32)
    wl = jax.random.normal(k3, (hidden, out_feats), jnp.float32) * 0.25
    bl = jnp.zeros((1, out_feats), jnp.float32)
    return (w1, b1, w2, b2, wl, bl)


def reference_forward(x, edge_index, batch, params, num_graphs, mimic_bf16=False):
    """Plain-JAX reference. mimic_bf16=True applies the same bf16 casts the
    kernels use for the A / activation / pool streams."""
    w1, b1, w2, b2, wl, bl = params
    n = x.shape[0]
    a = build_norm_adj(edge_index, n, n, jnp.float32)
    p_t = build_pool_t(batch, n, num_graphs, n, num_graphs, jnp.float32)
    if mimic_bf16:
        cast = lambda v: v.astype(jnp.bfloat16).astype(jnp.float32)
    else:
        cast = lambda v: v
    a = cast(a)
    h = jnp.tanh(a @ (cast(x) @ w1) + b1)
    h = jnp.tanh(a @ (cast(h) @ w2) + b2)
    g = cast(p_t).T @ cast(h)
    return g @ wl + bl


if __name__ == "__main__":
    key = jax.random.PRNGKey(0)
    k_x, k_p = jax.random.split(key)

    # 20 small ring graphs with 10 nodes each -> 200 nodes, padded to 256.
    nodes_per_graph = 10
    num_graphs = 20
    n = nodes_per_graph * num_graphs

    x = jax.random.normal(k_x, (n, 2), jnp.float32)

    srcs, dsts = [], []
    for g in range(num_graphs):
        off = g * nodes_per_graph
        for i in range(nodes_per_graph):
            a, b = off + i, off + (i + 1) % nodes_per_graph
            srcs += [a, b]
            dsts += [b, a]
    edge_index = jnp.array([srcs, dsts], dtype=jnp.int32)        # [2, 400]
    batch = jnp.repeat(jnp.arange(num_graphs, dtype=jnp.int32), nodes_per_graph)

    params = init_params(k_p)

    fwd = jax.jit(gcn_forward,
                  static_argnames=("num_graphs", "force_streaming", "tile_n"))

    # Path 1: fully-fused, A resident in VMEM (default for small graphs).
    out_fused = jax.block_until_ready(
        fwd(x, edge_index, batch, params, num_graphs=num_graphs))
    assert out_fused.shape == (num_graphs, 1)

    # Path 2: streamed layers (exercises the tiled/accumulator path; tile_n=128
    # forces a 2-step grid for the 256-node padded problem).
    out_stream = jax.block_until_ready(
        fwd(x, edge_index, batch, params, num_graphs=num_graphs,
            force_streaming=True, tile_n=128))
    assert out_stream.shape == (num_graphs, 1)

    ref_bf16 = reference_forward(x, edge_index, batch, params, num_graphs,
                                 mimic_bf16=True)
    ref_f32 = reference_forward(x, edge_index, batch, params, num_graphs,
                                mimic_bf16=False)

    for out in (out_fused, out_stream):
        assert jnp.allclose(out, ref_bf16, atol=2e-2, rtol=2e-2), (out, ref_bf16)
        assert jnp.allclose(out, ref_f32, atol=1e-1, rtol=1e-1), (out, ref_f32)
    assert jnp.allclose(out_fused, out_stream, atol=5e-3, rtol=5e-3), (
        out_fused, out_stream)

    print("KERNEL_OK")
</pallas_src>

<mosaic_0001>
module attributes {stable_mosaic.version = 11 : i64} {
  func.func private @main(%arg0: i32) attributes {dimension_semantics = [#tpu.dimension_semantics<core_parallel>], iteration_bounds = array<i64: 2>, tpu.core_type = #tpu.core_type<sc_scalar_subcore>, window_params = []} {
    return
  }
}

module attributes {stable_mosaic.version = 11 : i64} {
  func.func private @main(%arg0: i32) attributes {dimension_semantics = [#tpu.dimension_semantics<core_parallel>], iteration_bounds = array<i64: 2>, tpu.core_type = #tpu.core_type<sc_scalar_subcore>, window_params = []} {
    return
  }
}

module attributes {stable_mosaic.version = 11 : i64} {
  func.func @gcn_fused_kernel(%arg0: memref<8x256xbf16, #tpu.memory_space<vmem>>, %arg1: memref<256x256xbf16, #tpu.memory_space<vmem>>, %arg2: memref<16x8xf32, #tpu.memory_space<vmem>>, %arg3: memref<16x1xf32, #tpu.memory_space<vmem>>, %arg4: memref<16x16xf32, #tpu.memory_space<vmem>>, %arg5: memref<16x1xf32, #tpu.memory_space<vmem>>, %arg6: memref<256x128xbf16, #tpu.memory_space<vmem>>, %arg7: memref<1x16xf32, #tpu.memory_space<vmem>>, %arg8: memref<1x1xf32, #tpu.memory_space<vmem>>, %arg9: memref<1x128xf32, #tpu.memory_space<vmem>>) attributes {dimension_semantics = [], scalar_prefetch = 0 : i64, scratch_operands = 0 : i64, tpu.core_type = #tpu.core_type<tc>} {
    %c0 = arith.constant 0 : index
    %c0_0 = arith.constant 0 : index
    %0 = vector.load %arg0[%c0, %c0_0] : memref<8x256xbf16, #tpu.memory_space<vmem>>, vector<8x256xbf16>
    %c0_1 = arith.constant 0 : index
    %c0_2 = arith.constant 0 : index
    %1 = vector.load %arg1[%c0_1, %c0_2] : memref<256x256xbf16, #tpu.memory_space<vmem>>, vector<256x256xbf16>
    %cst = arith.constant dense<0.000000e+00> : vector<8x256xf32>
    %2 = tpu.matmul %0, %1, %cst {dimension_numbers = #tpu.dot_dimension_numbers<[1], [0], [0], [1], [0, 0, 1, 1], [], []>} : vector<8x256xbf16>, vector<256x256xbf16>, vector<8x256xf32> -> vector<8x256xf32>
    %c0_3 = arith.constant 0 : index
    %c0_4 = arith.constant 0 : index
    %3 = vector.load %arg2[%c0_3, %c0_4] : memref<16x8xf32, #tpu.memory_space<vmem>>, vector<16x8xf32>
    %cst_5 = arith.constant dense<0.000000e+00> : vector<16x256xf32>
    %4 = tpu.matmul %3, %2, %cst_5 {dimension_numbers = #tpu.dot_dimension_numbers<[1], [0], [0], [1], [0, 0, 1, 1], [], []>} : vector<16x8xf32>, vector<8x256xf32>, vector<16x256xf32> -> vector<16x256xf32>
    %c0_6 = arith.constant 0 : index
    %c0_7 = arith.constant 0 : index
    %5 = vector.load %arg3[%c0_6, %c0_7] : memref<16x1xf32, #tpu.memory_space<vmem>>, vector<16x1xf32>
    %6 = vector.broadcast %5 : vector<16x1xf32> to vector<16x256xf32>
    %7 = arith.addf %4, %6 : vector<16x256xf32>
    %8 = math.tanh %7 : vector<16x256xf32>
    %9 = arith.truncf %8 : vector<16x256xf32> to vector<16x256xbf16>
    %c0_8 = arith.constant 0 : index
    %c0_9 = arith.constant 0 : index
    %10 = vector.load %arg1[%c0_8, %c0_9] : memref<256x256xbf16, #tpu.memory_space<vmem>>, vector<256x256xbf16>
    %cst_10 = arith.constant dense<0.000000e+00> : vector<16x256xf32>
    %11 = tpu.matmul %9, %10, %cst_10 {dimension_numbers = #tpu.dot_dimension_numbers<[1], [0], [0], [1], [0, 0, 1, 1], [], []>} : vector<16x256xbf16>, vector<256x256xbf16>, vector<16x256xf32> -> vector<16x256xf32>
    %c0_11 = arith.constant 0 : index
    %c0_12 = arith.constant 0 : index
    %12 = vector.load %arg4[%c0_11, %c0_12] : memref<16x16xf32, #tpu.memory_space<vmem>>, vector<16x16xf32>
    %cst_13 = arith.constant dense<0.000000e+00> : vector<16x256xf32>
    %13 = tpu.matmul %12, %11, %cst_13 {dimension_numbers = #tpu.dot_dimension_numbers<[1], [0], [0], [1], [0, 0, 1, 1], [], []>} : vector<16x16xf32>, vector<16x256xf32>, vector<16x256xf32> -> vector<16x256xf32>
    %c0_14 = arith.constant 0 : index
    %c0_15 = arith.constant 0 : index
    %14 = vector.load %arg5[%c0_14, %c0_15] : memref<16x1xf32, #tpu.memory_space<vmem>>, vector<16x1xf32>
    %15 = vector.broadcast %14 : vector<16x1xf32> to vector<16x256xf32>
    %16 = arith.addf %13, %15 : vector<16x256xf32>
    %17 = math.tanh %16 : vector<16x256xf32>
    %18 = arith.truncf %17 : vector<16x256xf32> to vector<16x256xbf16>
    %c0_16 = arith.constant 0 : index
    %c0_17 = arith.constant 0 : index
    %19 = vector.load %arg6[%c0_16, %c0_17] : memref<256x128xbf16, #tpu.memory_space<vmem>>, vector<256x128xbf16>
    %cst_18 = arith.constant dense<0.000000e+00> : vector<16x128xf32>
    %20 = tpu.matmul %18, %19, %cst_18 {dimension_numbers = #tpu.dot_dimension_numbers<[1], [0], [0], [1], [0, 0, 1, 1], [], []>} : vector<16x256xbf16>, vector<256x128xbf16>, vector<16x128xf32> -> vector<16x128xf32>
    %c0_19 = arith.constant 0 : index
    %c0_20 = arith.constant 0 : index
    %21 = vector.load %arg7[%c0_19, %c0_20] : memref<1x16xf32, #tpu.memory_space<vmem>>, vector<1x16xf32>
    %cst_21 = arith.constant dense<0.000000e+00> : vector<1x128xf32>
    %22 = tpu.matmul %21, %20, %cst_21 {dimension_numbers = #tpu.dot_dimension_numbers<[1], [0], [0], [1], [0, 0, 1, 1], [], []>} : vector<1x16xf32>, vector<16x128xf32>, vector<1x128xf32> -> vector<1x128xf32>
    %c0_22 = arith.constant 0 : index
    %c0_23 = arith.constant 0 : index
    %23 = vector.load %arg8[%c0_22, %c0_23] : memref<1x1xf32, #tpu.memory_space<vmem>>, vector<1x1xf32>
    %24 = vector.broadcast %23 : vector<1x1xf32> to vector<1x128xf32>
    %25 = arith.addf %22, %24 : vector<1x128xf32>
    %c0_24 = arith.constant 0 : index
    %c0_25 = arith.constant 0 : index
    %26 = vector.load %arg9[%c0_24, %c0_25] : memref<1x128xf32, #tpu.memory_space<vmem>>, vector<1x128xf32>
    tpu.vector_store %arg9[%c0_24, %c0_25], %25 {strides = array<i32>} : memref<1x128xf32, #tpu.memory_space<vmem>>, vector<1x128xf32>,
    return
  }
}

</mosaic_0001>

<bundles_post_ra>
// kernel: gcn_forward.1
= control target key start
LH: loop header
LB: loop body
LE: loop exit
PB: predicated region body
PF: predicated region fallthrough
CT: control target
= control target key end

     0   :  { %v959_v35 = vmov 0.0   ;;  %v960_v36 = vmov 0   ;;  %vm290_vm0 = vcmask 64512   ;;  %vm437_vm1 = vcmask 130048   ;;  %s1208_s1 = inlined_call_operand.vmem [shape: bf16[256,256], index: 1, kind: input, shape index: {}]   ;;  %s1209_s0 = inlined_call_operand.vmem [shape: bf16[8,256], index: 0, kind: input, shape index: {}]   ;;  %s1210_s3 = inlined_call_operand.vmem [shape: f32[16,1], index: 3, kind: input, shape index: {}]   ;;  %s1211_s8 = inlined_call_operand.<no memory space> [shape: f32[1,1], index: 8, kind: input, shape index: {}]   ;;  %s1212_s2 = inlined_call_operand.vmem [shape: f32[16,8], index: 2, kind: input, shape index: {}]   ;;  %s1213_s5 = inlined_call_operand.vmem [shape: f32[16,1], index: 5, kind: input, shape index: {}]   ;;  %s1214_s6 = inlined_call_operand.vmem [shape: bf16[256,128], index: 6, kind: input, shape index: {}]   ;;  %s1215_s4 = inlined_call_operand.vmem [shape: f32[16,16], index: 4, kind: input, shape index: {}]   ;;  %s1216_s7 = inlined_call_operand.vmem [shape: f32[1,16], index: 7, kind: input, shape index: {}]   ;;  %s1217_s9 = inlined_call_operand.vmem [shape: f32[1,128], index: 9, kind: output, shape index: {}]  }
   0x1   :  { %v877_v0 = vld [vmem:[%s1208_s1 + $0x74] ss:$8 sps:$4 sm:$0xff]   ;;  %v879_v1 = vld [vmem:[%s1208_s1 + $0x70] ss:$8 sps:$4 sm:$0xff]   ;;  %v880_v2 = vld [vmem:[%s1208_s1 + $0x64] ss:$8 sps:$4 sm:$0xff]   ;;  %875 = vset.pattern.permute.xlu0 %v960_v36  ;;  %v14_v38 = vstv %s1211_s8  ;;  %876 = vset.pattern.permute.xlu1 %v960_v36 }
   0x2   :  { %235 = vmatprep.subr.bf16.mxu0 %v877_v0  ;;  %380 = vmatprep.subr.bf16.mxu1 %v877_v0  ;;  %v882_v3 = vld [vmem:[%s1208_s1 + $0x60] ss:$8 sps:$4 sm:$0xff]   ;;  %v883_v4 = vld [vmem:[%s1208_s1 + $0x54] ss:$8 sps:$4 sm:$0xff]   ;;  %v885_v5 = vld [vmem:[%s1208_s1 + $0x50] ss:$8 sps:$4 sm:$0xff]  }
   0x3   :  { %236 = vmatpush1.bf16.msra.mxu0 %v879_v1  ;;  %381 = vmatpush1.bf16.msra.mxu1 %v879_v1  ;;  %v886_v6 = vld [vmem:[%s1208_s1 + $0x44] ss:$8 sps:$4 sm:$0xff]   ;;  %v888_v7 = vld [vmem:[%s1208_s1 + $0x40] ss:$8 sps:$4 sm:$0xff]   ;;  %v889_v8 = vld [vmem:[%s1208_s1 + $0x34] ss:$8 sps:$4 sm:$0xff]  }
   0x4   :  { %237 = vmatprep.subr.bf16.mxu0 %v880_v2  ;;  %382 = vmatprep.subr.bf16.mxu1 %v880_v2  ;;  %v891_v9 = vld [vmem:[%s1208_s1 + $0x30] ss:$8 sps:$4 sm:$0xff]   ;;  %v892_v10 = vld [vmem:[%s1208_s1 + $0x24] ss:$8 sps:$4 sm:$0xff]   ;;  %v894_v11 = vld [vmem:[%s1208_s1 + $0x20] ss:$8 sps:$4 sm:$0xff]  }
   0x5   :  { %v895_v12 = vld [vmem:[%s1208_s1 + $0x14] ss:$8 sps:$4 sm:$0xff]   ;;  %v1054_v13 = vld [vmem:[%s1209_s0] sm:$0xff]  ;;  %v897_v15 = vld [vmem:[%s1208_s1 + $0x10] ss:$8 sps:$4 sm:$0xff]   ;;  %vm961_vm2 = vmmov 0  }
   0x6   :  { %v786_v14 = vcombine.high %v1054_v13, %v1054_v13  ;;  %v898_v16 = vld [vmem:[%s1208_s1 + $0x4] ss:$8 sps:$4 sm:$0xff]   ;;  %v900_v17 = vld [vmem:[%s1208_s1] ss:$8 sps:$4 sm:$0xff]   ;;  %v901_v18 = vld [vmem:[%s1208_s1 + $0xf4] ss:$8 sps:$4 sm:$0xff]   ;;  %v785_v34 = vcombine.low %v1054_v13, %v1054_v13 }
   0x7   :  { %238 = vmatpush1.bf16.msra.mxu0 %v882_v3  ;;  %383 = vmatpush1.bf16.msra.mxu1 %v882_v3  ;;  %v903_v19 = vld [vmem:[%s1208_s1 + $0xf0] ss:$8 sps:$4 sm:$0xff]   ;;  %v904_v20 = vld [vmem:[%s1208_s1 + $0xe4] ss:$8 sps:$4 sm:$0xff]   ;;  %v906_v21 = vld [vmem:[%s1208_s1 + $0xe0] ss:$8 sps:$4 sm:$0xff]  }
   0x8   :  { %239 = vmatprep.subr.bf16.mxu0 %v883_v4  ;;  %384 = vmatprep.subr.bf16.mxu1 %v883_v4  ;;  %v907_v22 = vld [vmem:[%s1208_s1 + $0xd4] ss:$8 sps:$4 sm:$0xff]   ;;  %v909_v23 = vld [vmem:[%s1208_s1 + $0xd0] ss:$8 sps:$4 sm:$0xff]   ;;  %v910_v24 = vld [vmem:[%s1208_s1 + $0xc4] ss:$8 sps:$4 sm:$0xff]  }
   0x9   :  { %267 = vmatprep.mubr.bf16.mxu0 %v786_v14  ;;  %v912_v25 = vld [vmem:[%s1208_s1 + $0xc0] ss:$8 sps:$4 sm:$0xff]   ;;  %v913_v26 = vld [vmem:[%s1208_s1 + $0xb4] ss:$8 sps:$4 sm:$0xff]   ;;  %v915_v27 = vld [vmem:[%s1208_s1 + $0xb0] ss:$8 sps:$4 sm:$0xff]  }
   0xa   :  { %v916_v28 = vld [vmem:[%s1208_s1 + $0xa4] ss:$8 sps:$4 sm:$0xff]   ;;  %v918_v29 = vld [vmem:[%s1208_s1 + $0xa0] ss:$8 sps:$4 sm:$0xff]   ;;  %v919_v30 = vld [vmem:[%s1208_s1 + $0x94] ss:$8 sps:$4 sm:$0xff]  }
   0xb   :  { %240 = vmatpush1.bf16.msra.mxu0 %v885_v5  ;;  %385 = vmatpush1.bf16.msra.mxu1 %v885_v5  ;;  %v921_v31 = vld [vmem:[%s1208_s1 + $0x90] ss:$8 sps:$4 sm:$0xff]   ;;  %v922_v32 = vld [vmem:[%s1208_s1 + $0x84] ss:$8 sps:$4 sm:$0xff]   ;;  %v924_v33 = vld [vmem:[%s1208_s1 + $0x80] ss:$8 sps:$4 sm:$0xff]  }
   0xc   :  { %241 = vmatprep.subr.bf16.mxu0 %v886_v6  ;;  %386 = vmatprep.subr.bf16.mxu1 %v886_v6  ;;  %v278_v37 = vld [vmem:[%s1210_s3] sm:$0xff]  ;;  %15 = vst [vmem:[#allocation2] sm:$0x1] %v14_v38  ;;  %v279_v39 = vld [vmem:[%s1210_s3 + $0x8] sm:$0xff]  ;;  %v927_v1 = vld [vmem:[%s1214_s6 + $0x78] sm:$0xff]  }
   0xd   :  { %282 = vperm.xlu0 %875, %v278_v37   ;;  %v276_v43 = vld [vmem:[%s1212_s2] sm:$0xff]  ;;  %v277_v46 = vld [vmem:[%s1212_s2 + $0x8] sm:$0xff]  ;;  %v928_v2 = vld [vmem:[%s1214_s6 + $0x38] sm:$0xff]  }
   0xe   :  { %v425_v63 = vld [vmem:[%s1213_s5] sm:$0xff]  ;;  %v426_v0 = vld [vmem:[%s1213_s5 + $0x8] sm:$0xff]  ;;  %v929_v3 = vld [vmem:[%s1214_s6 + $0x70] sm:$0xff]  }
   0xf   :  { %242 = vmatpush1.bf16.msra.mxu0 %v888_v7  ;;  %387 = vmatpush1.bf16.msra.mxu1 %v888_v7  ;;  %v930_v4 = vld [vmem:[%s1214_s6 + $0x30] sm:$0xff]   ;;  %v933_v13 = vld [vmem:[%s1214_s6 + $0x60] sm:$0xff]  }
  0x10   :  { %243 = vmatprep.subr.bf16.mxu0 %v889_v8  ;;  %388 = vmatprep.subr.bf16.mxu1 %v889_v8  ;;  %v934_v14 = vld [vmem:[%s1214_s6 + $0x20] sm:$0xff]  }
  0x11   :  { %287 = vperm.xlu0 %875, %v279_v39   ;;  %429 = vperm.xlu1 %876, %v425_v63  }
  0x13   :  { %244 = vmatpush1.bf16.msra.mxu0 %v891_v9  ;;  %389 = vmatpush1.bf16.msra.mxu1 %v891_v9  ;;  %v697_v40 = vld [vmem:[#allocation2] sm:$0x1] }
  0x14   :  { %245 = vmatprep.subr.bf16.mxu0 %v892_v10  ;;  %390 = vmatprep.subr.bf16.mxu1 %v892_v10  ;;  %v423_v9 = vld [vmem:[%s1215_s4] sm:$0xff]  ;;  %v424_v10 = vld [vmem:[%s1215_s4 + $0x8] sm:$0xff] }
  0x15   :  { %700 = vperm.xlu0 %875, %v697_v40   ;;  %434 = vperm.xlu1 %876, %v426_v0  }
  0x17   :  { %246 = vmatpush1.bf16.msra.mxu0 %v894_v11  ;;  %391 = vmatpush1.bf16.msra.mxu1 %v894_v11  ;;  %v931_v11 = vld [vmem:[%s1214_s6 + $0x68] sm:$0xff]  }
  0x18   :  { %247 = vmatprep.subr.bf16.mxu0 %v895_v12  ;;  %392 = vmatprep.subr.bf16.mxu1 %v895_v12  ;;  %v932_v12 = vld [vmem:[%s1214_s6 + $0x28] sm:$0xff]  }
  0x1b   :  { %248 = vmatpush1.bf16.msra.mxu0 %v897_v15  ;;  %393 = vmatpush1.bf16.msra.mxu1 %v897_v15  ;;  %v935_v15 = vld [vmem:[%s1214_s6 + $0x58] sm:$0xff]  }
  0x1c   :  { %249 = vmatprep.subr.bf16.mxu0 %v898_v16  ;;  %394 = vmatprep.subr.bf16.mxu1 %v898_v16  ;;  %v936_v16 = vld [vmem:[%s1214_s6 + $0x18] sm:$0xff]  }
  0x1f   :  { %250 = vmatpush1.bf16.msra.mxu0 %v900_v17  ;;  %395 = vmatpush1.bf16.msra.mxu1 %v900_v17  ;;  %v937_v17 = vld [vmem:[%s1214_s6 + $0x50] sm:$0xff]  }
  0x20   :  { %251 = vmatprep.subr.bf16.mxu0 %v901_v18  ;;  %396 = vmatprep.subr.bf16.mxu1 %v901_v18  ;;  %v938_v18 = vld [vmem:[%s1214_s6 + $0x10] sm:$0xff]  }
  0x23   :  { %252 = vmatpush2.bf16.msra.mxu0 %v903_v19  ;;  %397 = vmatpush2.bf16.msra.mxu1 %v903_v19  ;;  %v939_v19 = vld [vmem:[%s1214_s6 + $0x48] sm:$0xff]  }
  0x24   :  { %253 = vmatprep.subr.bf16.mxu0 %v904_v20  ;;  %398 = vmatprep.subr.bf16.mxu1 %v904_v20  ;;  %v940_v20 = vld [vmem:[%s1214_s6 + $0x8] sm:$0xff]  }
  0x27   :  { %254 = vmatpush2.bf16.msra.mxu0 %v906_v21  ;;  %399 = vmatpush2.bf16.msra.mxu1 %v906_v21  ;;  %v941_v21 = vld [vmem:[%s1214_s6 + $0x40] sm:$0xff]  }
  0x28   :  { %255 = vmatprep.subr.bf16.mxu0 %v907_v22  ;;  %400 = vmatprep.subr.bf16.mxu1 %v907_v22  ;;  %v942_v22 = vld [vmem:[%s1214_s6] sm:$0xff]  }
  0x2b   :  { %256 = vmatpush2.bf16.msra.mxu0 %v909_v23  ;;  %401 = vmatpush2.bf16.msra.mxu1 %v909_v23 }
  0x2c   :  { %257 = vmatprep.subr.bf16.mxu0 %v910_v24  ;;  %402 = vmatprep.subr.bf16.mxu1 %v910_v24 }
  0x2f   :  { %258 = vmatpush2.bf16.msra.mxu0 %v912_v25  ;;  %403 = vmatpush2.bf16.msra.mxu1 %v912_v25 }
  0x30   :  { %259 = vmatprep.subr.bf16.mxu0 %v913_v26  ;;  %404 = vmatprep.subr.bf16.mxu1 %v913_v26 }
  0x33   :  { %260 = vmatpush2.bf16.msra.mxu0 %v915_v27  ;;  %405 = vmatpush2.bf16.msra.mxu1 %v915_v27 }
  0x34   :  { %261 = vmatprep.subr.bf16.mxu0 %v916_v28  ;;  %406 = vmatprep.subr.bf16.mxu1 %v916_v28 }
  0x37   :  { %262 = vmatpush2.bf16.msra.mxu0 %v918_v29  ;;  %407 = vmatpush2.bf16.msra.mxu1 %v918_v29 }
  0x38   :  { %263 = vmatprep.subr.bf16.mxu0 %v919_v30  ;;  %408 = vmatprep.subr.bf16.mxu1 %v919_v30 }
  0x3b   :  { %264 = vmatpush2.bf16.msra.mxu0 %v921_v31  ;;  %409 = vmatpush2.bf16.msra.mxu1 %v921_v31 }
  0x3c   :  { %265 = vmatprep.subr.bf16.mxu0 %v922_v32  ;;  %410 = vmatprep.subr.bf16.mxu1 %v922_v32 }
  0x3f   :  { %266 = vmatpush2.bf16.msra.mxu0 %v924_v33  ;;  %411 = vmatpush2.bf16.msra.mxu1 %v924_v33 }
  0x40   :  { %840 = vmatprep.subr.bf16.mxu1 %v927_v1 }
  0x42   :  { %268 = vmatmul.mubr.bf16.vlgmr.msra.gmra.mxu0 %v785_v34 }
  0x43   :  { %361 = vmatprep.mubr.f32.mxu0 %v959_v35 }
  0x88   :  { %v283_v47 = vpop.permute.xlu0 %282 }
  0x8c   :  { %v288_v51 = vpop.permute.xlu0 %287  ;;  %v430_v23 = vpop.permute.xlu1 %429 }
  0x90   :  { %v435_v27 = vpop.permute.xlu1 %434 }
 0x102   :  { %v269_v41 = vpop.f32.mrf.mxu0 }
 0x104   :  { %v271_v42 = vpop.f32.mrf.mxu0 }
 0x105   :  { %327 = vmatprep.subr.mxu0 %v271_v42 }
 0x106   :  { %v273_v44 = vpop.f32.mrf.mxu0  ;;  %328 = vmatpush1.msra.mxu0 %v269_v41 }
 0x107   :  { %819 = vmatmul.mubr.msk.f32.vlgmr.msra.gmra.mxu0 %vm290_vm0, %v276_v43 }
 0x108   :  { %v274_v45 = vpop.f32.mrf.mxu0  ;;  %367 = vmatprep.mubr.f32.mxu0 %v959_v35 }
 0x10b   :  { %820 = vmatmul.mubr.msk.f32.gmra.mxu0 %vm290_vm0, %v277_v46  ;;  %v696_v46 = vld [vmem:[%s1216_s7] sm:$0x1] }
 0x10c   :  { %508 = vmatprep.mubr.f32.mxu0 %v959_v35 }
 0x1c7   :  { %v363_v48 = vpop.f32.mrf.mxu0 }
 0x1c8   :  { %v364_v54 = vadd.f32 %v363_v48, %v283_v47 }
 0x1c9   :  { %v365_v49 = vpop.f32.mrf.mxu0 }
 0x1ca   :  { %v366_v50 = vadd.f32 %v365_v49, %v283_v47  ;;  %v703_v47 = vlaneseq }
 0x1cb   :  { %v369_v52 = vpop.f32.mrf.mxu0 }
 0x1cc   :  { %v370_v53 = vadd.f32 %v369_v52, %v288_v51  ;;  %943 = vtanh.f32 %v366_v50  ;;  %v704_v48 = vshrl.u32 %v703_v47, 7  ;;  %v701_v50 = vpop.permute.xlu0 %700 }
 0x1cd   :  { %v371_v55 = vpop.f32.mrf.mxu0 }
 0x1ce   :  { %v372_v56 = vadd.f32 %v371_v55, %v288_v51  ;;  %945 = vtanh.f32 %v370_v53  ;;  %v705_v49 = vsub.s32 0, %v704_v48 }
 0x1d0   :  { %947 = vtanh.f32 %v372_v56  ;;  %v706_v51 = vrot.slane %v701_v50, %v705_v49 }
 0x1d1   :  { %949 = vtanh.f32 %v364_v54 }
 0x1d9   :  { %v944_v57 = vpop.eup %943 }
 0x1db   :  { %v946_v58 = vpop.eup %945 }
 0x1dd   :  { %v948_v59 = vpop.eup %947 }
 0x1de   :  { %v950_v60 = vpop.eup %949  ;;  %v379_v61 = vpack.c.bf16 %v948_v59, %v944_v57 }
 0x1df   :  { %v378_v62 = vpack.c.bf16 %v946_v58, %v950_v60 }
 0x1e0   :  { %412 = vmatprep.mubr.bf16.mxu1 %v379_v61 }
 0x1e1   :  { %413 = vmatmul.mubr.bf16.vlgmr.msra.gmra.mxu1 %v378_v62 }
 0x1e2   :  { %841 = vmatpush3.bf16.msra.mxu1 %v928_v2 }
 0x1e3   :  { %842 = vmatprep.subr.bf16.mxu1 %v929_v3 }
 0x1e6   :  { %843 = vmatpush3.bf16.msra.mxu1 %v930_v4 }
 0x1e7   :  { %844 = vmatprep.subr.bf16.mxu1 %v931_v11 }
 0x1ea   :  { %845 = vmatpush3.bf16.msra.mxu1 %v932_v12 }
 0x1eb   :  { %846 = vmatprep.subr.bf16.mxu1 %v933_v13 }
 0x1ee   :  { %847 = vmatpush3.bf16.msra.mxu1 %v934_v14 }
 0x1ef   :  { %848 = vmatprep.subr.bf16.mxu1 %v935_v15 }
 0x1f2   :  { %849 = vmatpush3.bf16.msra.mxu1 %v936_v16 }
 0x1f3   :  { %850 = vmatprep.subr.bf16.mxu1 %v937_v17 }
 0x1f6   :  { %851 = vmatpush3.bf16.msra.mxu1 %v938_v18 }
 0x1f7   :  { %852 = vmatprep.subr.bf16.mxu1 %v939_v19 }
 0x1fa   :  { %853 = vmatpush3.bf16.msra.mxu1 %v940_v20 }
 0x1fb   :  { %854 = vmatprep.subr.bf16.mxu1 %v941_v21 }
 0x1fe   :  { %855 = vmatpush3.bf16.msra.mxu1 %v942_v22 }
 0x2a1   :  { %v414_v5 = vpop.f32.mrf.mxu1 }
 0x2a3   :  { %v416_v6 = vpop.f32.mrf.mxu1 }
 0x2a5   :  { %v418_v7 = vpop.f32.mrf.mxu1 }
 0x2a7   :  { %v420_v8 = vpop.f32.mrf.mxu1 }
 0x2a8   :  { %472 = vmatprep.subr.mxu0 %v420_v8 }
 0x2a9   :  { %473 = vmatpush1.msra.mxu0 %v418_v7 }
 0x2aa   :  { %474 = vmatprep.subr.mxu0 %v416_v6 }
 0x2ab   :  { %475 = vmatpush1.msra.mxu0 %v414_v5 }
 0x2ac   :  { %821 = vmatmul.mubr.msk.f32.vlgmr.msra.gmra.mxu0 %vm437_vm1, %v423_v9  ;;  %865 = vmatprep.subr.mxu0 %v959_v35 }
 0x2ad   :  { %514 = vmatprep.mubr.f32.mxu0 %v959_v35 }
 0x2b0   :  { %822 = vmatmul.mubr.msk.f32.gmra.mxu0 %vm437_vm1, %v424_v10 }
 0x2b1   :  { %869 = vmatprep.mubr.msk.f32.mxu0 %vm961_vm2, %v959_v35 }
 0x36c   :  { %v510_v24 = vpop.f32.mrf.mxu0 }
 0x36d   :  { %v511_v30 = vadd.f32 %v510_v24, %v430_v23 }
 0x36e   :  { %v512_v25 = vpop.f32.mrf.mxu0 }
 0x36f   :  { %v513_v26 = vadd.f32 %v512_v25, %v430_v23 }
 0x370   :  { %v516_v28 = vpop.f32.mrf.mxu0 }
 0x371   :  { %v517_v29 = vadd.f32 %v516_v28, %v435_v27  ;;  %951 = vtanh.f32 %v513_v26 }
 0x372   :  { %v518_v31 = vpop.f32.mrf.mxu0 }
 0x373   :  { %v519_v32 = vadd.f32 %v518_v31, %v435_v27  ;;  %953 = vtanh.f32 %v517_v29 }
 0x375   :  { %955 = vtanh.f32 %v519_v32 }
 0x376   :  { %957 = vtanh.f32 %v511_v30 }
 0x37e   :  { %v952_v33 = vpop.eup %951 }
 0x380   :  { %v954_v34 = vpop.eup %953 }
 0x382   :  { %v956_v36 = vpop.eup %955 }
 0x383   :  { %v958_v37 = vpop.eup %957  ;;  %v526_v38 = vpack.c.bf16 %v956_v36, %v952_v33 }
 0x384   :  { %v525_v39 = vpack.c.bf16 %v954_v34, %v958_v37 }
 0x385   :  { %687 = vmatprep.mubr.bf16.mxu1 %v526_v38 }
 0x386   :  { %688 = vmatmul.mubr.bf16.vlgmr.msra.gmra.mxu1 %v525_v39 }
 0x446   :  { %v856_v40 = vpop.f32.mrf.mxu1 }
 0x448   :  { %v857_v41 = vpop.f32.mrf.mxu1 }
 0x449   :  { %v858_v45 = vadd.f32 %v857_v41, %v856_v40 }
 0x44a   :  { %v859_v42 = vpop.f32.mrf.mxu1 }
 0x44c   :  { %v860_v43 = vpop.f32.mrf.mxu1 }
 0x44d   :  { %v861_v44 = vadd.f32 %v860_v43, %v859_v42 }
 0x44f   :  { %866 = vmatpush3.msra.mxu0 %v861_v44 }
 0x450   :  { %867 = vmatprep.subr.mxu0 %v959_v35 }
 0x451   :  { %868 = vmatpush3.msra.mxu0 %v858_v45 }
 0x452   :  { %870 = vmatmul.mubr.msk.f32.vlgmr.msra.gmra.mxu0 %vm437_vm1, %v696_v46 }
 0x512   :  { %v776_v52 = vpop.f32.mrf.mxu0 }
 0x513   :  { %v777_v53 = vadd.f32 %v776_v52, %v706_v51 }
 0x514   :  { %v871_v54 = vpop.f32.mrf.mxu0 }
 0x515   :  { %780 = vst [vmem:[%s1217_s9] sm:$0x1] %v777_v53 }

</bundles_post_ra>
